<compile_context>
chip_gen: v6e
topology: v6e:2x2x1
jax: 0.10.0
libtpu: 0.0.40
codegen_flags: <defaults>
</compile_context>

<pallas_src>
import functools
import math

import jax
import jax.numpy as jnp
from jax.experimental import pallas as pl
from jax.experimental.pallas import tpu as pltpu


def _round_up(n, m):
    return ((n + m - 1) // m) * m


# Conservative budget for the double-buffered tiles (fits v5e's 16 MiB scoped
# VMEM default with headroom; v6e/v7x have at least as much).
_VMEM_TILE_BUDGET = 8 * 1024 * 1024


def _sinusoidal_pos_emb_kernel(x_ref, out_ref, *, neg_scale, half_dim):
    # x_ref:   (TB, 1)        f32 timesteps (un-scaled; *1000 folded into freqs)
    # out_ref: (TB, dim_pad)  f32, lanes [0:half_dim) = sin, [half_dim:dim) = cos
    dim_pad = out_ref.shape[1]
    lane = jax.lax.broadcasted_iota(jnp.int32, (1, dim_pad), 1)
    is_sin = lane < half_dim
    k = jnp.where(is_sin, lane, lane - half_dim).astype(jnp.float32)
    freqs = 1000.0 * jnp.exp(k * neg_scale)                      # (1, dim_pad), EUP
    phase = jnp.where(is_sin, 0.0, jnp.float32(math.pi / 2.0))   # cos(t)=sin(t+pi/2)
    # One mul + one add + one sin per output element; single lane-dense store.
    out_ref[...] = jnp.sin(x_ref[...] * freqs + phase)


def sinusoidal_pos_emb(x, dim, *, block_rows=1024):
    """x: (B,) or (B, 1) timesteps. Returns (B, dim) float32 embedding."""
    assert dim % 2 == 0 and dim >= 4, "dim must be even and >= 4"
    x = jnp.asarray(x, jnp.float32).reshape(-1)                  # == x.squeeze()
    B = x.shape[0]
    half_dim = dim // 2
    neg_scale = -(math.log(10000.0) / (half_dim - 1))

    # Tail-only lane padding: single contiguous strip at the end (no-op when
    # dim is already a multiple of 128).
    dim_pad = _round_up(dim, 128)

    # Batch tile: largest multiple of 8 that (a) respects the double-buffered
    # VMEM budget (output tile + the (TB,1) input block, which (8,128) native
    # tiling inflates to 512 B/row), (b) keeps >= 2 grid steps when B >= 16 so
    # both v7x TensorCores get work, and (c) never exceeds B (block dims must
    # be multiples of 8 or equal to the full array extent).
    if B <= 8:
        TB = B
    else:
        bytes_per_row = 2 * (dim_pad * 4 + 512)
        tb_vmem = max(8, (_VMEM_TILE_BUDGET // bytes_per_row) // 8 * 8)
        TB = min(block_rows, tb_vmem, (B // 8) * 8)
        if B >= 16:
            TB = min(TB, _round_up(pl.cdiv(B, 2), 8))
        TB = max(8, TB)

    grid = pl.cdiv(B, TB)
    x2d = x.reshape(B, 1)

    kernel = functools.partial(
        _sinusoidal_pos_emb_kernel, neg_scale=neg_scale, half_dim=half_dim)

    out = pl.pallas_call(
        kernel,
        out_shape=jax.ShapeDtypeStruct((B, dim_pad), jnp.float32),
        grid_spec=pltpu.PrefetchScalarGridSpec(
            num_scalar_prefetch=0,
            grid=(grid,),
            in_specs=[pl.BlockSpec((TB, 1), lambda i: (i, 0))],
            out_specs=pl.BlockSpec((TB, dim_pad), lambda i: (i, 0)),
        ),
        compiler_params=pltpu.CompilerParams(
            dimension_semantics=("parallel",)),
    )(x2d)

    if dim_pad != dim:
        out = out[:, :dim]   # contiguous tail strip (only when dim % 128 != 0)
    return out


def _reference(x, dim):
    x = jnp.asarray(x, jnp.float32).reshape(-1) * 1000.0
    half_dim = dim // 2
    scale = math.log(10000.0) / (half_dim - 1)
    freqs = jnp.exp(jnp.arange(half_dim, dtype=jnp.float32) * -scale)
    emb = x[:, None] * freqs[None, :]
    return jnp.concatenate([jnp.sin(emb), jnp.cos(emb)], axis=-1)


if __name__ == "__main__":
    key = jax.random.PRNGKey(0)

    # Case 1: typical module usage, normalized timesteps of shape (B, 1).
    B, dim = 8, 32
    x = jax.random.uniform(key, (B, 1), dtype=jnp.float32)
    out = jax.block_until_ready(sinusoidal_pos_emb(x, dim))
    ref = _reference(x, dim)
    assert out.shape == (B, dim), out.shape
    # Arguments reach ~1000*max(x): f32 association/range-reduction gives
    # ~1e-4-level sensitivity, hence the 1e-3 tolerance on values in [-1, 1].
    assert jnp.allclose(out, ref, atol=1e-3, rtol=1e-3), "mismatch vs reference"

    # Case 2: multi-step parallel batch grid with a ragged final block, and a
    # dim that is already a multiple of 128 (zero-padding / zero-strip path).
    key2 = jax.random.PRNGKey(1)
    B2, dim2 = 1000, 256
    x2 = jax.random.uniform(key2, (B2,), dtype=jnp.float32)
    out2 = jax.block_until_ready(sinusoidal_pos_emb(x2, dim2))
    ref2 = _reference(x2, dim2)
    assert out2.shape == (B2, dim2), out2.shape
    assert jnp.allclose(out2, ref2, atol=1e-3, rtol=1e-3), "mismatch (tiled case)"

    print("KERNEL_OK")
</pallas_src>

<mosaic_0001>
module attributes {stable_mosaic.version = 11 : i64} {
  func.func @_sinusoidal_pos_emb_kernel(%arg0: i32, %arg1: memref<8x1xf32, #tpu.memory_space<vmem>>, %arg2: memref<8x128xf32, #tpu.memory_space<vmem>>) attributes {dimension_semantics = [#tpu.dimension_semantics<parallel>], iteration_bounds = array<i64: 1>, scalar_prefetch = 0 : i64, scratch_operands = 0 : i64, tpu.core_type = #tpu.core_type<tc>, window_params = [{transform_indices = @transform_0, window_bounds = array<i64: 8, 1>}, {transform_indices = @transform_1, window_bounds = array<i64: 8, 128>}]} {
    %0 = tpu.iota {dimensions = array<i32: 1>} : vector<1x128xi32>
    %c16_i32 = arith.constant 16 : i32
    %1 = vector.broadcast %c16_i32 : i32 to vector<1x128xi32>
    %2 = arith.cmpi slt, %0, %1 : vector<1x128xi32>
    %c16_i32_0 = arith.constant 16 : i32
    %3 = vector.broadcast %c16_i32_0 : i32 to vector<1x128xi32>
    %4 = arith.subi %0, %3 : vector<1x128xi32>
    %5 = arith.select %2, %0, %4 : vector<1x128xi1>, vector<1x128xi32>
    %6 = arith.sitofp %5 : vector<1x128xi32> to vector<1x128xf32>
    %cst = arith.constant -0.614022672 : f32
    %7 = vector.broadcast %cst : f32 to vector<1x128xf32>
    %8 = arith.mulf %6, %7 : vector<1x128xf32>
    %9 = math.exp %8 : vector<1x128xf32>
    %cst_1 = arith.constant 1.000000e+03 : f32
    %10 = vector.broadcast %cst_1 : f32 to vector<1x128xf32>
    %11 = arith.mulf %10, %9 : vector<1x128xf32>
    %cst_2 = arith.constant 0.000000e+00 : f32
    %cst_3 = arith.constant 1.57079637 : f32
    %12 = vector.broadcast %cst_2 : f32 to vector<1x128xf32>
    %13 = vector.broadcast %cst_3 : f32 to vector<1x128xf32>
    %14 = arith.select %2, %12, %13 : vector<1x128xi1>, vector<1x128xf32>
    %c0 = arith.constant 0 : index
    %c0_4 = arith.constant 0 : index
    %15 = vector.load %arg1[%c0, %c0_4] : memref<8x1xf32, #tpu.memory_space<vmem>>, vector<8x1xf32>
    %16 = vector.broadcast %15 : vector<8x1xf32> to vector<8x128xf32>
    %17 = vector.broadcast %11 : vector<1x128xf32> to vector<8x128xf32>
    %18 = arith.mulf %16, %17 : vector<8x128xf32>
    %19 = vector.broadcast %14 : vector<1x128xf32> to vector<8x128xf32>
    %20 = arith.addf %18, %19 : vector<8x128xf32>
    %21 = math.sin %20 : vector<8x128xf32>
    %c0_5 = arith.constant 0 : index
    %c0_6 = arith.constant 0 : index
    %22 = vector.load %arg2[%c0_5, %c0_6] : memref<8x128xf32, #tpu.memory_space<vmem>>, vector<8x128xf32>
    tpu.vector_store %arg2[%c0_5, %c0_6], %21 {strides = array<i32>} : memref<8x128xf32, #tpu.memory_space<vmem>>, vector<8x128xf32>,
    return
  }
  func.func @transform_0(%arg0: i32) -> (i32, i32) {
    %c0_i32 = arith.constant 0 : i32
    %c0_i32_0 = arith.constant 0 : i32
    return %arg0, %c0_i32 : i32, i32
  }
  func.func @transform_1(%arg0: i32) -> (i32, i32) {
    %c0_i32 = arith.constant 0 : i32
    %c0_i32_0 = arith.constant 0 : i32
    return %arg0, %c0_i32 : i32, i32
  }
}

</mosaic_0001>

<bundles_post_ra>
// kernel: tpu_custom_call.1
= control target key start
LH: loop header
LB: loop body
LE: loop exit
PB: predicated region body
PF: predicated region fallthrough
CT: control target
= control target key end

     0   :  { %v194_v1 = vmov 0   ;;  %s240_s0 = inlined_call_operand.vmem [shape: f32[8,1], index: 0, kind: input, shape index: {}]   ;;  %s241_s1 = inlined_call_operand.hbm [shape: f32[8,128], index: 1, kind: output, shape index: {}]  }
   0x1   :  { %v20_v0 = vld [vmem:[%s240_s0] sm:$0xff]  ;;  %165 = vset.pattern.permute.xlu0 %v194_v1 }
   0x2   :  { %6 = vsyncpa [#allocation3], 0  ;;  %23 = vperm.xlu0 %165, %v20_v0   ;;  %v9_v2 = vlaneseq  ;;  %v195_v12 = vmov 1.5707964   ;;  %v196_v27 = vmov 2102212464  }
   0x3   :  { %v197_v29 = vmov 920167782   ;;  %v198_v33 = vmov 1326507024   ;;  %v199_v35 = vmov 683565275  }
   0x4   :  { %v10_v3 = vand.u32 127, %v9_v2  ;;  %v200_v37 = vmov 2475754826   ;;  %v201_v40 = vmov 2131351028   ;;  %s202_s0 = smov [#allocation2]  }
   0x5   :  { %s139_s8 = sshll.u32 %s202_s0, 4  ;;  %s140_s8 = int_to_ptr.vmem [resolvable:$true] %s139_s8 }
   0x6   :  { %v147_v4 = vadd.s32 4294967280, %v10_v3  ;;  %vm11_vm0 = vcmp.lt.s32.totalorder %v10_v3, 16  ;;  %s172_s9 = scalar_lea.vmem %s140_s8, 128  ;;  %p177_p1 = scmp.lt.s32.totalorder %s140_s8, %s140_s8 }
   0x7   :  { %v19_v13 = vsel %vm11_vm0, 0.0, %v195_v12  ;;  %p173_p0 = scmp.ne.s32.totalorder %s140_s8, %s172_s9  ;;  %p178_p2 = scmp.lt.s32.totalorder %s172_s9, %s172_s9 }
   0x8   :  { %v13_v5 = vsel %vm11_vm0, %v10_v3, %v147_v4 }
   0x9   :  { %v14_v6 = vcvt.s32.f32 %v13_v5  ;;  %p179_p3 = por %p178_p2, %p177_p1 }
   0xb   :  { %v15_v7 = vmul.f32 -0.6140227, %v14_v6  ;;  %p180_p4 = pnand %p179_p3, %p173_p0 }
   0xd   :  { %v16_v8 = vmul.f32 1.442695, %v15_v7 }
   0xf   :  { %166 = vpow2.f32 %v16_v8 }
  0x1c   :  { %v167_v9 = vpop.eup %166 }
  0x1d   :  { %v18_v10 = vmul.f32 1000.0, %v167_v9 }
  0x7d   :  { %v24_v11 = vpop.permute.xlu0 %23 }
  0x7e   :  { %v26_v14 = vmul.f32 %v24_v11, %v18_v10 }
  0x80   :  { %v216_v15 = vadd.f32 %v26_v14, %v19_v13 }
  0x82   :  { %v31_v16 = vand.u32 2139095040, %v216_v15  ;;  %v28_v17 = vand.u32 2147483647, %v216_v15  ;;  %vm30_vm8 = vcmp.lt.s32.totalorder %v216_v15, 0  ;;  %vm120_vm13 = vweird.f32 %v216_v15 }
  0x84   :  { %v32_v18 = vshrl.u32 %v31_v16, 23  ;;  %v35_v20 = vand.u32 8388607, %v28_v17  ;;  %vm29_vm9 = vcmp.le.f32.partialorder %v28_v17, 0.7853982 }
  0x86   :  { %v148_v19 = vadd.s32 4294967169, %v32_v18  ;;  %v36_v23 = vor.u32 8388608, %v35_v20 }
  0x88   :  { %v38_v21 = vadd.s32 1, %v148_v19  ;;  %v76_v31 = vshll.u32 %v36_v23, 8 }
  0x8a   :  { %vm39_vm1 = vcmp.gt.s32.totalorder %v38_v21, 0 }
  0x8b   :  { %v40_v22 = vsel %vm39_vm1, %v38_v21, 0 }
  0x8c   :  { %v42_v24 = vand.u32 31, %v40_v22  ;;  %v41_v25 = vshrl.u32 %v40_v22, 5 }
  0x8e   :  { %v43_v26 = vsub.s32 32, %v42_v24  ;;  %v54_v28 = vshll.u32 %v196_v27, %v42_v24  ;;  %v57_v30 = vshll.u32 %v197_v29, %v42_v24  ;;  %v45_v36 = vshll.u32 %v199_v35, %v42_v24 }
  0x8f   :  { %v48_v39 = vshll.u32 %v200_v37, %v42_v24  ;;  %v51_v42 = vshll.u32 %v201_v40, %v42_v24  ;;  %vm63_vm2 = vcmp.lt.s32.totalorder %v41_v25, 4  ;;  %vm60_vm3 = vcmp.lt.s32.totalorder %v41_v25, 1 }
  0x90   :  { %v55_v32 = vshrl.u32 %v197_v29, %v43_v26  ;;  %v58_v34 = vshrl.u32 %v198_v33, %v43_v26  ;;  %v46_v38 = vshrl.u32 %v200_v37, %v43_v26  ;;  %v49_v41 = vshrl.u32 %v201_v40, %v43_v26 }
  0x91   :  { %v52_v43 = vshrl.u32 %v196_v27, %v43_v26  ;;  %v44_v47 = vshrl.u32 %v199_v35, %v43_v26  ;;  %vm61_vm4 = vcmp.lt.s32.totalorder %v41_v25, 2  ;;  %vm62_vm5 = vcmp.lt.s32.totalorder %v41_v25, 3 }
  0x92   :  { %v56_v44 = vor.u32 %v55_v32, %v54_v28  ;;  %v59_v45 = vor.u32 %v58_v34, %v57_v30  ;;  %v47_v46 = vor.u32 %v46_v38, %v45_v36  ;;  %v50_v48 = vor.u32 %v49_v41, %v48_v39 }
  0x93   :  { %v53_v49 = vor.u32 %v52_v43, %v51_v42 }
  0x94   :  { %v69_v50 = vsel %vm63_vm2, %v56_v44, 920167782  ;;  %v73_v51 = vsel %vm63_vm2, %v59_v45, 1326507024  ;;  %v68_v53 = vsel %vm60_vm3, %v47_v46, %v50_v48  ;;  %v64_v56 = vsel %vm60_vm3, %v44_v47, %v47_v46 }
  0x95   :  { %v65_v52 = vsel %vm63_vm2, %v53_v49, 2102212464  ;;  %v70_v54 = vsel %vm62_vm5, %v53_v49, %v69_v50  ;;  %v72_v55 = vsel %vm60_vm3, %v50_v48, %v53_v49  ;;  %v74_v59 = vsel %vm62_vm5, %v56_v44, %v73_v51 }
  0x96   :  { %v66_v57 = vsel %vm62_vm5, %v50_v48, %v65_v52  ;;  %v71_v58 = vsel %vm61_vm4, %v68_v53, %v70_v54  ;;  %v75_v60 = vsel %vm61_vm4, %v72_v55, %v74_v59 }
  0x97   :  { %v222_v61 = vmul.u32.u64.low %v76_v31, %v71_v58  ;;  %v223_v62 = vmul.u32.u64.high %v76_v31, %v71_v58, %v222_v61  ;;  %v225_v63 = vmul.u32.u64.low %v76_v31, %v75_v60  ;;  %v226_v0 = vmul.u32.u64.high %v76_v31, %v75_v60, %v225_v63 }
  0x98   :  { %v67_v1 = vsel %vm61_vm4, %v64_v56, %v66_v57 }
  0x99   :  { %v86_v2 = vadd.s32 1, %v223_v62  ;;  %v83_v3 = vmul.u32 %v76_v31, %v67_v1  ;;  %vm85_vm6 = vc.u32 %v226_v0, %v222_v61  ;;  %v84_v16 = vadd.s32 %v222_v61, %v226_v0 }
  0x9b   :  { %v87_v4 = vsel %vm85_vm6, %v86_v2, %v223_v62 }
  0x9c   :  { %v88_v5 = vadd.s32 %v87_v4, %v83_v3 }
  0x9e   :  { %v89_v6 = vadd.s32 536870912, %v88_v5 }
  0xa0   :  { %v90_v7 = vshrl.u32 %v89_v6, 30 }
  0xa2   :  { %v91_v8 = vshll.u32 %v90_v7, 30  ;;  %v114_v30 = vsub.s32 4, %v90_v7 }
  0xa4   :  { %v92_v9 = vsub.s32 %v88_v5, %v91_v8  ;;  %v115_v33 = vsel %vm30_vm8, %v114_v30, %v90_v7 }
  0xa5   :  { %v117_v34 = vsel %vm29_vm9, 0, %v115_v33 }
  0xa6   :  { %v94_v10 = vsub.s32 0, %v92_v9  ;;  %v121_v35 = vadd.s32 3, %v117_v34 }
  0xa8   :  { %v149_v11 = vmin.u32 %v94_v10, %v92_v9  ;;  %v122_v36 = vand.u32 3, %v121_v35 }
  0xaa   :  { %v96_v12 = vclz %v149_v11  ;;  %vm127_vm10 = vcmp.eq.s32.totalorder %v122_v36, 2  ;;  %vm124_vm11 = vcmp.eq.s32.totalorder %v122_v36, 0  ;;  %vm123_vm12 = vcmp.lt.s32.totalorder %v122_v36, 2 }
  0xac   :  { %v150_v13 = vadd.s32 4294967294, %v96_v12 }
  0xae   :  { %vm151_vm7 = vcmp.lt.s32.totalorder %v150_v13, 0 }
  0xaf   :  { %v99_v14 = vsel %vm151_vm7, 0, %v150_v13 }
  0xb0   :  { %v100_v18 = vsub.s32 32, %v99_v14  ;;  %v104_v19 = vsub.s32 4294967266, %v99_v14  ;;  %v101_v20 = vshll.u32 %v92_v9, %v99_v14 }
  0xb2   :  { %v102_v21 = vshrl.u32 %v84_v16, %v100_v18  ;;  %v105_v22 = vadd.s32 127, %v104_v19 }
  0xb4   :  { %v103_v23 = vor.u32 %v102_v21, %v101_v20  ;;  %v106_v24 = vshll.u32 %v105_v22, 23 }
  0xb6   :  { %v107_v25 = vor.u32 4788187, %v106_v24  ;;  %v110_v27 = vcvt.s32.f32 %v103_v23 }
  0xb8   :  { %v108_v26 = vand.u32 2147483647, %v107_v25 }
  0xba   :  { %v111_v28 = vmul.f32 %v110_v27, %v108_v26 }
  0xbc   :  { %v112_v29 = vxor.u32 2147483648, %v111_v28 }
  0xbe   :  { %v113_v31 = vsel %vm30_vm8, %v112_v29, %v111_v28 }
  0xbf   :  { %v116_v32 = vsel %vm29_vm9, %v216_v15, %v113_v31 }
  0xc0   :  { %168 = vcosq.f32 %v116_v32 }
  0xc1   :  { %170 = vsinq.f32 %v116_v32 }
  0xcd   :  { %v169_v37 = vpop.eup %168 }
  0xce   :  { %v171_v38 = vpop.eup %170  ;;  %v128_v39 = vxor.u32 2147483648, %v169_v37 }
  0xcf   :  { %v125_v40 = vxor.u32 2147483648, %v171_v38 }
  0xd0   :  { %v129_v41 = vsel %vm127_vm10, %v128_v39, %v171_v38 }
  0xd1   :  { %v126_v17 = vsel %vm124_vm11, %v169_v37, %v125_v40 }
  0xd2   :  { %v130_v42 = vsel %vm123_vm12, %v126_v17, %v129_v41 }
  0xd3   :  { %v131_v43 = vsel %vm120_vm13, nan, %v130_v42 }
  0xd4   :  { %132 = vst [vmem:[#allocation2] sm:$0xff] %v131_v43 }
  0xd5   :  { %183 = shalt.err (!%p180_p4)
}
  0xd6   :  { %142 = dma.vmem_to_hbm [thread:$0]  %s140_s8, 128, %s241_s1, [#allocation3]  }
  0xd7   :  { %192 = dma.done.wait [#allocation3], 128  }
  0xd8   :  { %193 = vsyncadd [#allocation3], 4294967168 }
  0xd9   :  { %146 = vsyncpa [#allocation3], 1 }

</bundles_post_ra>
